<compile_context>
chip_gen: v5e
topology: v5e:2x2
jax: 0.10.0
libtpu: 0.0.40
codegen_flags: <defaults>
</compile_context>

<pallas_src>
import functools

import jax
import jax.numpy as jnp
from jax.experimental import pallas as pl
from jax.experimental.pallas import tpu as pltpu


_VMEM_LIMIT_BYTES = 32 * 1024 * 1024        # explicit scoped-VMEM budget (v5e/v6e/v7x safe)
_TARGET_PADDED_BLOCK_ELEMS = 512 * 1024     # ~2 MiB f32 per VMEM buffer, padding included
_MAX_TNK = 4096                             # lane-dense tile cap (multiple of 128)


def _round_up(x, m):
    return (x + m - 1) // m * m


def _pick_tnk(nk):
    """Largest multiple-of-128 tile dividing nk, capped at _MAX_TNK."""
    if nk <= _MAX_TNK or nk % 128 != 0:
        # Small or oddly-sized spatial extent: full-dim escape hatch.
        # TODO(synk): masked tail tiles for huge nk that is not a multiple of 128.
        return nk
    t = _MAX_TNK
    while t >= 128:
        if nk % t == 0:
            return t
        t -= 128
    return nk


def _pick_tb(b, c, tnk):
    """Largest divisor of b keeping a (TB, c_pad, tnk) f32 block near the target size."""
    c_pad = _round_up(c, 8)                  # VMEM footprint uses sublane-padded channel count
    want = max(1, _TARGET_PADDED_BLOCK_ELEMS // max(1, c_pad * tnk))
    tb = 1
    for d in range(1, b + 1):
        if b % d == 0 and d <= want:
            tb = d
    return tb


def _stats_kernel(x_ref, psum_ref, psq_ref, sum_sc, sq_sc, *, acc_w, lane_groups):
    """Per-(batch-group, channel) partial sum / sum-of-squares."""
    j = pl.program_id(1)

    @pl.when(j == 0)
    def _():
        sum_sc[...] = jnp.zeros_like(sum_sc)
        sq_sc[...] = jnp.zeros_like(sq_sc)

    xb = x_ref[...].astype(jnp.float32)          # (TB, c, TNK)
    bsum = jnp.sum(xb, axis=0)                   # (c, TNK) -- VPU adds over batch-group axis
    bsq = jnp.sum(xb * xb, axis=0)               # (c, TNK)

    s = sum_sc[...]
    q = sq_sc[...]
    for g in range(lane_groups):                 # static lane-group slices: VPU adds, no XLU
        lo = g * acc_w
        s = s + bsum[:, lo:lo + acc_w]
        q = q + bsq[:, lo:lo + acc_w]
    sum_sc[...] = s
    sq_sc[...] = q

    @pl.when(j == pl.num_programs(1) - 1)
    def _():                                     # single cross-lane reduce per batch group
        psum_ref[...] = jnp.sum(sum_sc[...], axis=-1, keepdims=True)[None]
        psq_ref[...] = jnp.sum(sq_sc[...], axis=-1, keepdims=True)[None]


def _normalize_kernel(x_ref, scale_ref, shift_ref, o_ref):
    """y = x * scale + shift (per channel), streaming, lane-dense output."""
    xb = x_ref[...].astype(jnp.float32)                          # (TB, c, TNK)
    y = xb * scale_ref[...] + shift_ref[...]                     # (1, c, 1) broadcast
    o_ref[...] = y.astype(o_ref.dtype)


def group_bn2d(x, gamma, beta, length, *, eps=1e-5):
    b, c, n, k = x.shape
    assert b % length == 0, "batch must be a multiple of `length`"
    assert gamma.shape == (c,) and beta.shape == (c,)
    # `length` only shapes the intermediate 5-D view in torch; the per-channel
    # statistics over (b, n, k) are identical, so it does not enter the math.
    nk = n * k
    m_total = b * nk

    tnk = _pick_tnk(nk)
    assert nk % tnk == 0
    tb = _pick_tb(b, c, tnk)
    grid = (b // tb, nk // tnk)

    acc_w = 128 if tnk % 128 == 0 else tnk
    lane_groups = tnk // acc_w

    x3 = x.reshape(b, c, nk)                     # free reshape (contiguous trailing dims)

    # ---- Pass 1: per-batch-group / per-channel partial stats -------------
    psum, psq = pl.pallas_call(
        functools.partial(_stats_kernel, acc_w=acc_w, lane_groups=lane_groups),
        out_shape=(
            jax.ShapeDtypeStruct((b // tb, c, 1), jnp.float32),
            jax.ShapeDtypeStruct((b // tb, c, 1), jnp.float32),
        ),
        grid_spec=pltpu.PrefetchScalarGridSpec(
            num_scalar_prefetch=0,
            grid=grid,
            in_specs=[pl.BlockSpec((tb, c, tnk), lambda i, j: (i, 0, j))],
            out_specs=[
                pl.BlockSpec((1, c, 1), lambda i, j: (i, 0, 0)),
                pl.BlockSpec((1, c, 1), lambda i, j: (i, 0, 0)),
            ],
            scratch_shapes=[
                pltpu.VMEM((c, acc_w), jnp.float32),
                pltpu.VMEM((c, acc_w), jnp.float32),
            ],
        ),
        compiler_params=pltpu.CompilerParams(
            dimension_semantics=("parallel", "arbitrary"),
            vmem_limit_bytes=_VMEM_LIMIT_BYTES),
    )(x3)

    # ---- Tiny combine (c elements): fold affine into scale/shift ---------
    total = jnp.sum(psum[:, :, 0], axis=0)       # (c,)
    totalsq = jnp.sum(psq[:, :, 0], axis=0)      # (c,)
    mean = total / m_total
    # E[x^2] - mean^2 can go slightly negative in f32; clamp before rsqrt.
    var = jnp.maximum(totalsq / m_total - mean * mean, 0.0)
    rstd = jax.lax.rsqrt(var + eps)
    scale = gamma.astype(jnp.float32) * rstd
    shift = beta.astype(jnp.float32) - mean * scale
    scale3 = scale.reshape(1, c, 1)
    shift3 = shift.reshape(1, c, 1)

    # ---- Pass 2: y = x * scale + shift ------------------------------------
    y3 = pl.pallas_call(
        _normalize_kernel,
        out_shape=jax.ShapeDtypeStruct((b, c, nk), x.dtype),
        grid_spec=pltpu.PrefetchScalarGridSpec(
            num_scalar_prefetch=0,
            grid=grid,
            in_specs=[
                pl.BlockSpec((tb, c, tnk), lambda i, j: (i, 0, j)),
                pl.BlockSpec((1, c, 1), lambda i, j: (0, 0, 0)),
                pl.BlockSpec((1, c, 1), lambda i, j: (0, 0, 0)),
            ],
            out_specs=pl.BlockSpec((tb, c, tnk), lambda i, j: (i, 0, j)),
        ),
        compiler_params=pltpu.CompilerParams(
            dimension_semantics=("parallel", "parallel"),
            vmem_limit_bytes=_VMEM_LIMIT_BYTES),
    )(x3, scale3, shift3)

    return y3.reshape(b, c, n, k)                # free reshape back to NCHW


def _reference(x, gamma, beta, eps=1e-5):
    xf = x.astype(jnp.float32)
    mean = jnp.mean(xf, axis=(0, 2, 3), keepdims=True)
    var = jnp.mean((xf - mean) ** 2, axis=(0, 2, 3), keepdims=True)  # biased
    y = (xf - mean) * jax.lax.rsqrt(var + eps)
    return y * gamma.reshape(1, -1, 1, 1) + beta.reshape(1, -1, 1, 1)


if __name__ == "__main__":
    length = 4          # GroupBN2d(channel, length)
    groups = 2
    b, c, n, k = groups * length, 4, 16, 16

    key = jax.random.PRNGKey(0)
    kx, kg, kb = jax.random.split(key, 3)
    x = jax.random.normal(kx, (b, c, n, k), dtype=jnp.float32)
    # BatchNorm3d default init is gamma=1, beta=0; use deterministic random
    # affine params so the affine path of the kernel is exercised.
    gamma = 1.0 + 0.1 * jax.random.normal(kg, (c,), dtype=jnp.float32)
    beta = 0.1 * jax.random.normal(kb, (c,), dtype=jnp.float32)

    out = group_bn2d(x, gamma, beta, length)
    out = jax.block_until_ready(out)

    ref = _reference(x, gamma, beta)
    assert out.shape == (b, c, n, k)
    assert jnp.allclose(out, ref, atol=1e-4, rtol=1e-4), "mismatch vs reference"
    print("KERNEL_OK")
</pallas_src>

<mosaic_0001>
module attributes {stable_mosaic.version = 11 : i64} {
  func.func @_stats_kernel(%arg0: i32, %arg1: i32, %arg2: memref<8x4x256xf32, #tpu.memory_space<vmem>>, %arg3: memref<1x4x1xf32, #tpu.memory_space<vmem>>, %arg4: memref<1x4x1xf32, #tpu.memory_space<vmem>>, %arg5: memref<4x128xf32, #tpu.memory_space<vmem>>, %arg6: memref<4x128xf32, #tpu.memory_space<vmem>>) attributes {dimension_semantics = [#tpu.dimension_semantics<parallel>, #tpu.dimension_semantics<arbitrary>], iteration_bounds = array<i64: 1, 1>, scalar_prefetch = 0 : i64, scratch_operands = 2 : i64, tpu.core_type = #tpu.core_type<tc>, window_params = [{transform_indices = @transform_0, window_bounds = array<i64: 8, 4, 256>}, {transform_indices = @transform_1, window_bounds = array<i64: 1, 4, 1>}, {transform_indices = @transform_2, window_bounds = array<i64: 1, 4, 1>}]} {
    %c0_i32 = arith.constant 0 : i32
    %0 = arith.cmpi eq, %arg1, %c0_i32 : i32
    %1 = arith.extui %0 : i1 to i32
    %c0_i32_0 = arith.constant 0 : i32
    %2 = arith.cmpi ne, %1, %c0_i32_0 : i32
    scf.if %2 {
      %cst_14 = arith.constant 0.000000e+00 : f32
      %22 = vector.broadcast %cst_14 : f32 to vector<4x128xf32>
      %c0_15 = arith.constant 0 : index
      %c0_16 = arith.constant 0 : index
      %23 = vector.load %arg5[%c0_15, %c0_16] : memref<4x128xf32, #tpu.memory_space<vmem>>, vector<4x128xf32>
      tpu.vector_store %arg5[%c0_15, %c0_16], %22 {strides = array<i32>} : memref<4x128xf32, #tpu.memory_space<vmem>>, vector<4x128xf32>,
      %cst_17 = arith.constant 0.000000e+00 : f32
      %24 = vector.broadcast %cst_17 : f32 to vector<4x128xf32>
      %c0_18 = arith.constant 0 : index
      %c0_19 = arith.constant 0 : index
      %25 = vector.load %arg6[%c0_18, %c0_19] : memref<4x128xf32, #tpu.memory_space<vmem>>, vector<4x128xf32>
      tpu.vector_store %arg6[%c0_18, %c0_19], %24 {strides = array<i32>} : memref<4x128xf32, #tpu.memory_space<vmem>>, vector<4x128xf32>,
    } else {
    }
    %c0 = arith.constant 0 : index
    %c0_1 = arith.constant 0 : index
    %c0_2 = arith.constant 0 : index
    %3 = vector.load %arg2[%c0, %c0_1, %c0_2] : memref<8x4x256xf32, #tpu.memory_space<vmem>>, vector<8x4x256xf32>
    %cst = arith.constant dense<0.000000e+00> : vector<4x256xf32>
    %4 = vector.multi_reduction <add>, %3, %cst [0] : vector<8x4x256xf32> to vector<4x256xf32>
    %5 = arith.mulf %3, %3 : vector<8x4x256xf32>
    %cst_3 = arith.constant dense<0.000000e+00> : vector<4x256xf32>
    %6 = vector.multi_reduction <add>, %5, %cst_3 [0] : vector<8x4x256xf32> to vector<4x256xf32>
    %c0_4 = arith.constant 0 : index
    %c0_5 = arith.constant 0 : index
    %7 = vector.load %arg5[%c0_4, %c0_5] : memref<4x128xf32, #tpu.memory_space<vmem>>, vector<4x128xf32>
    %c0_6 = arith.constant 0 : index
    %c0_7 = arith.constant 0 : index
    %8 = vector.load %arg6[%c0_6, %c0_7] : memref<4x128xf32, #tpu.memory_space<vmem>>, vector<4x128xf32>
    %9 = vector.extract_strided_slice %4 {offsets = [0, 0], sizes = [4, 128], strides = [1, 1]} : vector<4x256xf32> to vector<4x128xf32>
    %10 = arith.addf %7, %9 : vector<4x128xf32>
    %11 = vector.extract_strided_slice %6 {offsets = [0, 0], sizes = [4, 128], strides = [1, 1]} : vector<4x256xf32> to vector<4x128xf32>
    %12 = arith.addf %8, %11 : vector<4x128xf32>
    %13 = vector.extract_strided_slice %4 {offsets = [0, 128], sizes = [4, 128], strides = [1, 1]} : vector<4x256xf32> to vector<4x128xf32>
    %14 = arith.addf %10, %13 : vector<4x128xf32>
    %15 = vector.extract_strided_slice %6 {offsets = [0, 128], sizes = [4, 128], strides = [1, 1]} : vector<4x256xf32> to vector<4x128xf32>
    %16 = arith.addf %12, %15 : vector<4x128xf32>
    %c0_8 = arith.constant 0 : index
    %c0_9 = arith.constant 0 : index
    %17 = vector.load %arg5[%c0_8, %c0_9] : memref<4x128xf32, #tpu.memory_space<vmem>>, vector<4x128xf32>
    tpu.vector_store %arg5[%c0_8, %c0_9], %14 {strides = array<i32>} : memref<4x128xf32, #tpu.memory_space<vmem>>, vector<4x128xf32>,
    %c0_10 = arith.constant 0 : index
    %c0_11 = arith.constant 0 : index
    %18 = vector.load %arg6[%c0_10, %c0_11] : memref<4x128xf32, #tpu.memory_space<vmem>>, vector<4x128xf32>
    tpu.vector_store %arg6[%c0_10, %c0_11], %16 {strides = array<i32>} : memref<4x128xf32, #tpu.memory_space<vmem>>, vector<4x128xf32>,
    %c0_i32_12 = arith.constant 0 : i32
    %19 = arith.cmpi eq, %arg1, %c0_i32_12 : i32
    %20 = arith.extui %19 : i1 to i32
    %c0_i32_13 = arith.constant 0 : i32
    %21 = arith.cmpi ne, %20, %c0_i32_13 : i32
    scf.if %21 {
      %c0_14 = arith.constant 0 : index
      %c0_15 = arith.constant 0 : index
      %22 = vector.load %arg5[%c0_14, %c0_15] : memref<4x128xf32, #tpu.memory_space<vmem>>, vector<4x128xf32>
      %cst_16 = arith.constant dense<0.000000e+00> : vector<4xf32>
      %23 = vector.multi_reduction <add>, %22, %cst_16 [1] : vector<4x128xf32> to vector<4xf32>
      %24 = vector.shape_cast %23 : vector<4xf32> to vector<4x1xf32>
      %25 = vector.shape_cast %24 : vector<4x1xf32> to vector<1x4x1xf32>
      %c0_17 = arith.constant 0 : index
      %c0_18 = arith.constant 0 : index
      %c0_19 = arith.constant 0 : index
      %26 = vector.load %arg3[%c0_17, %c0_18, %c0_19] : memref<1x4x1xf32, #tpu.memory_space<vmem>>, vector<1x4x1xf32>
      tpu.vector_store %arg3[%c0_17, %c0_18, %c0_19], %25 {strides = array<i32>} : memref<1x4x1xf32, #tpu.memory_space<vmem>>, vector<1x4x1xf32>,
      %c0_20 = arith.constant 0 : index
      %c0_21 = arith.constant 0 : index
      %27 = vector.load %arg6[%c0_20, %c0_21] : memref<4x128xf32, #tpu.memory_space<vmem>>, vector<4x128xf32>
      %cst_22 = arith.constant dense<0.000000e+00> : vector<4xf32>
      %28 = vector.multi_reduction <add>, %27, %cst_22 [1] : vector<4x128xf32> to vector<4xf32>
      %29 = vector.shape_cast %28 : vector<4xf32> to vector<4x1xf32>
      %30 = vector.shape_cast %29 : vector<4x1xf32> to vector<1x4x1xf32>
      %c0_23 = arith.constant 0 : index
      %c0_24 = arith.constant 0 : index
      %c0_25 = arith.constant 0 : index
      %31 = vector.load %arg4[%c0_23, %c0_24, %c0_25] : memref<1x4x1xf32, #tpu.memory_space<vmem>>, vector<1x4x1xf32>
      tpu.vector_store %arg4[%c0_23, %c0_24, %c0_25], %30 {strides = array<i32>} : memref<1x4x1xf32, #tpu.memory_space<vmem>>, vector<1x4x1xf32>,
    } else {
    }
    return
  }
  func.func @transform_0(%arg0: i32, %arg1: i32) -> (i32, i32, i32) {
    %c0_i32 = arith.constant 0 : i32
    %c0_i32_0 = arith.constant 0 : i32
    return %arg0, %c0_i32, %arg1 : i32, i32, i32
  }
  func.func @transform_1(%arg0: i32, %arg1: i32) -> (i32, i32, i32) {
    %c0_i32 = arith.constant 0 : i32
    %c0_i32_0 = arith.constant 0 : i32
    %c0_i32_1 = arith.constant 0 : i32
    return %arg0, %c0_i32, %c0_i32_0 : i32, i32, i32
  }
  func.func @transform_2(%arg0: i32, %arg1: i32) -> (i32, i32, i32) {
    %c0_i32 = arith.constant 0 : i32
    %c0_i32_0 = arith.constant 0 : i32
    %c0_i32_1 = arith.constant 0 : i32
    return %arg0, %c0_i32, %c0_i32_0 : i32, i32, i32
  }
}

</mosaic_0001>

<bundles_post_ra>
// kernel: tpu_custom_call.1
= control target key start
LH: loop header
LB: loop body
LE: loop exit
PB: predicated region body
PF: predicated region fallthrough
CT: control target
= control target key end

     0   :  { %8 = vsyncpa [#allocation5], 0  ;;  %s272_s12 = smov [#allocation4]   ;;  %s273_s14 = smov 128   ;;  %s349_s0 = inlined_call_operand.hbm [shape: f32[8,4,256], index: 0, kind: input, shape index: {}]   ;;  %s350_s1 = inlined_call_operand.vmem [shape: f32[1,4,1], index: 1, kind: output, shape index: {0}]   ;;  %s351_s2 = inlined_call_operand.vmem [shape: f32[1,4,1], index: 2, kind: output, shape index: {1}]  }
   0x1   :  { %s13_s11 = sshll.u32 %s349_s0, 4  ;;  %s15_s13 = sshll.u32 %s272_s12, 4  ;;  %s14_s11 = int_to_ptr.hbm [resolvable:$true] %s13_s11  ;;  %s16_s13 = int_to_ptr.vmem [resolvable:$true] %s15_s13 }
   0x2   :  { %s274_s15 = smov 8  }
   0x3   :  { %21 = dma.hbm_to_vmem [thread:$0]  %s14_s11, 1024, %s16_s13, [#allocation5], %s273_s14, %s273_s14, %s274_s15  }
   0x4   :  { %270 = dma.done.wait [#allocation5], 1024  }
   0x5   :  { %271 = vsyncadd [#allocation5], 4294966272  ;;  %v275_v0 = vmov 0.0   ;;  %v32_v1 = vld [vmem:[#allocation4] sm:$0xff]  ;;  %v33_v2 = vld [vmem:[#allocation4 + $0x8] sm:$0xff]  ;;  %vm91_vm0 = vcmask 1043456  }
   0x6   :  { %30 = vst [vmem:[#allocation2] sm:$0xf] %v275_v0  ;;  %v34_v3 = vld [vmem:[#allocation4 + $0x10] sm:$0xff]  ;;  %v35_v4 = vld [vmem:[#allocation4 + $0x18] sm:$0xff]  ;;  %v294_v5 = vld [vmem:[#allocation4 + $0x20] sm:$0xff]  ;;  %v122_v31 = vmul.f32 %v32_v1, %v32_v1  ;;  %v123_v35 = vmul.f32 %v33_v2, %v33_v2  ;;  %vm226_vm1 = vcmask 3072  }
   0x7   :  { %31 = vst [vmem:[#allocation3] sm:$0xf] %v275_v0  ;;  %v296_v6 = vld [vmem:[#allocation4 + $0x28] sm:$0xff]  ;;  %v298_v9 = vld [vmem:[#allocation4 + $0x30] sm:$0xff]  ;;  %v39_v16 = vld [vmem:[#allocation4 + $0x38] sm:$0xff]  ;;  %v124_v39 = vmul.f32 %v34_v3, %v34_v3  ;;  %v125_v42 = vmul.f32 %v35_v4, %v35_v4  ;;  %v126_v59 = vmul.f32 %v294_v5, %v294_v5 }
   0x8   :  { %48 = vst [vmem:[#allocation1] ss:$2 sm:$0xff] %v32_v1  ;;  %v127_v63 = vmul.f32 %v296_v6, %v296_v6 }
   0x9   :  { %52 = vst [vmem:[#allocation1 + $0x10] ss:$2 sm:$0xff] %v33_v2 }
   0xa   :  { %56 = vst [vmem:[#allocation1 + $0x20] ss:$2 sm:$0xff] %v34_v3 }
   0xb   :  { %60 = vst [vmem:[#allocation1 + $0x30] ss:$2 sm:$0xff] %v35_v4 }
   0xd   :  { %v211_v57 = vld [vmem:[#allocation2] sm:$0xf] }
   0xf   :  { %v49_v7 = vld.sshfl [vmem:[#allocation1] sm:$0xff pattern:$0x75316420]  ;;  %v50_v8 = vld.sshfl [vmem:[#allocation1 + $0x8] sm:$0xff pattern:$0x75316420] }
  0x10   :  { %v53_v10 = vld.sshfl [vmem:[#allocation1 + $0x10] sm:$0xff pattern:$0x75316420]  ;;  %v54_v11 = vld.sshfl [vmem:[#allocation1 + $0x18] sm:$0xff pattern:$0x75316420] }
  0x11   :  { %v57_v12 = vld.sshfl [vmem:[#allocation1 + $0x20] sm:$0xff pattern:$0x75316420]  ;;  %v58_v13 = vld.sshfl [vmem:[#allocation1 + $0x28] sm:$0xff pattern:$0x75316420] }
  0x12   :  { %v61_v14 = vld.sshfl [vmem:[#allocation1 + $0x30] sm:$0xff pattern:$0x75316420]  ;;  %v62_v15 = vld.sshfl [vmem:[#allocation1 + $0x38] sm:$0xff pattern:$0x75316420] }
  0x13   :  { %63 = vst [vmem:[#allocation1] ss:$2 sm:$0xff] %v294_v5  ;;  %v92_v17 = vsel %vm91_vm0, %v49_v7, 0.0  ;;  %v93_v18 = vsel %vm91_vm0, %v53_v10, 0.0  ;;  %v95_v20 = vsel %vm91_vm0, %v57_v12, 0.0  ;;  %v107_v21 = vsel %vm91_vm0, %v50_v8, 0.0 }
  0x14   :  { %66 = vst [vmem:[#allocation1 + $0x10] ss:$2 sm:$0xff] %v296_v6  ;;  %v94_v19 = vadd.f32 %v93_v18, %v92_v17  ;;  %v108_v22 = vsel %vm91_vm0, %v54_v11, 0.0  ;;  %v110_v24 = vsel %vm91_vm0, %v58_v13, 0.0  ;;  %v97_v26 = vsel %vm91_vm0, %v61_v14, 0.0 }
  0x15   :  { %69 = vst [vmem:[#allocation1 + $0x20] ss:$2 sm:$0xff] %v298_v9  ;;  %v109_v23 = vadd.f32 %v108_v22, %v107_v21  ;;  %v112_v28 = vsel %vm91_vm0, %v62_v15, 0.0  ;;  %v128_v7 = vmul.f32 %v298_v9, %v298_v9  ;;  %v129_v8 = vmul.f32 %v39_v16, %v39_v16 }
  0x16   :  { %72 = vst [vmem:[#allocation1 + $0x30] ss:$2 sm:$0xff] %v39_v16  ;;  %v96_v25 = vadd.f32 %v95_v20, %v94_v19 }
  0x17   :  { %v111_v27 = vadd.f32 %v110_v24, %v109_v23 }
  0x18   :  { %v98_v34 = vadd.f32 %v97_v26, %v96_v25 }
  0x19   :  { %v113_v38 = vadd.f32 %v112_v28, %v111_v27 }
  0x1a   :  { %v64_v29 = vld.sshfl [vmem:[#allocation1] sm:$0xff pattern:$0x75316420]  ;;  %v65_v30 = vld.sshfl [vmem:[#allocation1 + $0x8] sm:$0xff pattern:$0x75316420] }
  0x1b   :  { %v67_v32 = vld.sshfl [vmem:[#allocation1 + $0x10] sm:$0xff pattern:$0x75316420]  ;;  %v68_v33 = vld.sshfl [vmem:[#allocation1 + $0x18] sm:$0xff pattern:$0x75316420] }
  0x1c   :  { %v70_v36 = vld.sshfl [vmem:[#allocation1 + $0x20] sm:$0xff pattern:$0x75316420]  ;;  %v71_v37 = vld.sshfl [vmem:[#allocation1 + $0x28] sm:$0xff pattern:$0x75316420] }
  0x1d   :  { %v73_v40 = vld.sshfl [vmem:[#allocation1 + $0x30] sm:$0xff pattern:$0x75316420]  ;;  %v74_v41 = vld.sshfl [vmem:[#allocation1 + $0x38] sm:$0xff pattern:$0x75316420] }
  0x1e   :  { %v99_v43 = vsel %vm91_vm0, %v64_v29, 0.0  ;;  %v101_v44 = vsel %vm91_vm0, %v67_v32, 0.0  ;;  %138 = vst [vmem:[#allocation1] ss:$2 sm:$0xff] %v122_v31  ;;  %v114_v46 = vsel %vm91_vm0, %v65_v30, 0.0  ;;  %v116_v47 = vsel %vm91_vm0, %v68_v33, 0.0 }
  0x1f   :  { %v100_v45 = vadd.f32 %v99_v43, %v98_v34  ;;  %142 = vst [vmem:[#allocation1 + $0x10] ss:$2 sm:$0xff] %v123_v35  ;;  %v103_v48 = vsel %vm91_vm0, %v70_v36, 0.0  ;;  %v115_v49 = vadd.f32 %v114_v46, %v113_v38  ;;  %v118_v51 = vsel %vm91_vm0, %v71_v37, 0.0 }
  0x20   :  { %146 = vst [vmem:[#allocation1 + $0x20] ss:$2 sm:$0xff] %v124_v39  ;;  %v105_v52 = vsel %vm91_vm0, %v73_v40, 0.0  ;;  %v120_v55 = vsel %vm91_vm0, %v74_v41, 0.0 }
  0x21   :  { %v102_v50 = vadd.f32 %v101_v44, %v100_v45  ;;  %150 = vst [vmem:[#allocation1 + $0x30] ss:$2 sm:$0xff] %v125_v42  ;;  %v117_v53 = vadd.f32 %v116_v47, %v115_v49 }
  0x23   :  { %v104_v54 = vadd.f32 %v103_v48, %v102_v50  ;;  %v119_v56 = vadd.f32 %v118_v51, %v117_v53  ;;  %v212_v48 = vld [vmem:[#allocation3] sm:$0xf] }
  0x25   :  { %v106_v58 = vadd.f32 %v105_v52, %v104_v54  ;;  %v139_v60 = vld.sshfl [vmem:[#allocation1] sm:$0xff pattern:$0x75316420]  ;;  %v140_v61 = vld.sshfl [vmem:[#allocation1 + $0x8] sm:$0xff pattern:$0x75316420]  ;;  %v121_v62 = vadd.f32 %v120_v55, %v119_v56 }
  0x26   :  { %v143_v0 = vld.sshfl [vmem:[#allocation1 + $0x10] sm:$0xff pattern:$0x75316420]  ;;  %v144_v1 = vld.sshfl [vmem:[#allocation1 + $0x18] sm:$0xff pattern:$0x75316420] }
  0x27   :  { %v213_v2 = vadd.f32 %v211_v57, %v106_v58  ;;  %v147_v3 = vld.sshfl [vmem:[#allocation1 + $0x20] sm:$0xff pattern:$0x75316420]  ;;  %v148_v4 = vld.sshfl [vmem:[#allocation1 + $0x28] sm:$0xff pattern:$0x75316420] }
  0x28   :  { %v151_v10 = vld.sshfl [vmem:[#allocation1 + $0x30] sm:$0xff pattern:$0x75316420]  ;;  %v152_v11 = vld.sshfl [vmem:[#allocation1 + $0x38] sm:$0xff pattern:$0x75316420] }
  0x29   :  { %v215_v12 = vadd.f32 %v213_v2, %v121_v62  ;;  %153 = vst [vmem:[#allocation1] ss:$2 sm:$0xff] %v126_v59  ;;  %v181_v5 = vsel %vm91_vm0, %v139_v60, 0.0  ;;  %v182_v13 = vsel %vm91_vm0, %v143_v0, 0.0  ;;  %v184_v14 = vsel %vm91_vm0, %v147_v3, 0.0 }
  0x2a   :  { %156 = vst [vmem:[#allocation1 + $0x10] ss:$2 sm:$0xff] %v127_v63  ;;  %v183_v6 = vadd.f32 %v182_v13, %v181_v5  ;;  %v196_v15 = vsel %vm91_vm0, %v140_v61, 0.0  ;;  %v197_v17 = vsel %vm91_vm0, %v144_v1, 0.0  ;;  %v199_v9 = vsel %vm91_vm0, %v148_v4, 0.0 }
  0x2b   :  { %217 = vst [vmem:[#allocation2] sm:$0xf] %v215_v12  ;;  %v198_v18 = vadd.f32 %v197_v17, %v196_v15  ;;  %v186_v19 = vsel %vm91_vm0, %v151_v10, 0.0  ;;  %v201_v20 = vsel %vm91_vm0, %v152_v11, 0.0 }
  0x2c   :  { %159 = vst [vmem:[#allocation1 + $0x20] ss:$2 sm:$0xff] %v128_v7  ;;  %v185_v16 = vadd.f32 %v184_v14, %v183_v6 }
  0x2d   :  { %162 = vst [vmem:[#allocation1 + $0x30] ss:$2 sm:$0xff] %v129_v8  ;;  %v200_v21 = vadd.f32 %v199_v9, %v198_v18 }
  0x2e   :  { %v187_v22 = vadd.f32 %v186_v19, %v185_v16 }
  0x2f   :  { %v202_v23 = vadd.f32 %v201_v20, %v200_v21 }
  0x30   :  { %v154_v24 = vld.sshfl [vmem:[#allocation1] sm:$0xff pattern:$0x75316420]  ;;  %v155_v25 = vld.sshfl [vmem:[#allocation1 + $0x8] sm:$0xff pattern:$0x75316420] }
  0x31   :  { %v157_v26 = vld.sshfl [vmem:[#allocation1 + $0x10] sm:$0xff pattern:$0x75316420]  ;;  %v158_v27 = vld.sshfl [vmem:[#allocation1 + $0x18] sm:$0xff pattern:$0x75316420] }
  0x32   :  { %v222_v28 = vld [vmem:[#allocation2] sm:$0xf]  ;;  %v188_v29 = vsel %vm91_vm0, %v154_v24, 0.0  ;;  %v190_v30 = vsel %vm91_vm0, %v157_v26, 0.0  ;;  %v203_v31 = vsel %vm91_vm0, %v155_v25, 0.0  ;;  %v205_v32 = vsel %vm91_vm0, %v158_v27, 0.0 }
  0x33   :  { %v223_v33 = vsel %vm91_vm0, %v222_v28, 0.0  ;;  %v160_v34 = vld.sshfl [vmem:[#allocation1 + $0x20] sm:$0xff pattern:$0x75316420]  ;;  %v189_v35 = vadd.f32 %v188_v29, %v187_v22  ;;  %v204_v36 = vadd.f32 %v203_v31, %v202_v23 }
  0x34   :  { %224 = vadd.xlane.f32.xlu0 %v223_v33  ;;  %v161_v37 = vld.sshfl [vmem:[#allocation1 + $0x28] sm:$0xff pattern:$0x75316420]  ;;  %v163_v38 = vld.sshfl [vmem:[#allocation1 + $0x30] sm:$0xff pattern:$0x75316420] }
  0x35   :  { %v164_v39 = vld.sshfl [vmem:[#allocation1 + $0x38] sm:$0xff pattern:$0x75316420]  ;;  %v191_v40 = vadd.f32 %v190_v30, %v189_v35  ;;  %v192_v41 = vsel %vm91_vm0, %v160_v34, 0.0  ;;  %v206_v42 = vadd.f32 %v205_v32, %v204_v36  ;;  %v194_v43 = vsel %vm91_vm0, %v163_v38, 0.0 }
  0x36   :  { %v207_v44 = vsel %vm91_vm0, %v161_v37, 0.0  ;;  %v209_v45 = vsel %vm91_vm0, %v164_v39, 0.0 }
  0x37   :  { %v193_v46 = vadd.f32 %v192_v41, %v191_v40  ;;  %v208_v47 = vadd.f32 %v207_v44, %v206_v42 }
  0x39   :  { %v195_v49 = vadd.f32 %v194_v43, %v193_v46  ;;  %v210_v50 = vadd.f32 %v209_v45, %v208_v47 }
  0x3b   :  { %v214_v51 = vadd.f32 %v212_v48, %v195_v49 }
  0x3d   :  { %v216_v52 = vadd.f32 %v214_v51, %v210_v50 }
  0x3f   :  { %218 = vst [vmem:[#allocation3] sm:$0xf] %v216_v52 }
  0x46   :  { %v228_v53 = vld [vmem:[#allocation3] sm:$0xf] }
  0x47   :  { %v229_v54 = vsel %vm91_vm0, %v228_v53, 0.0 }
  0x48   :  { %230 = vadd.xlane.f32.xlu0 %v229_v54 }
  0xa7   :  { %v225_v55 = vpop.xlane.xlu0 %224 }
  0xa8   :  { %227 = vst.msk [vmem:[%s350_s1] sm:$0xf] %vm226_vm1, %v225_v55 }
  0xbb   :  { %v231_v56 = vpop.xlane.xlu0 %230 }
  0xbc   :  { %232 = vst.msk [vmem:[%s351_s2] sm:$0xf] %vm226_vm1, %v231_v56 }
  0xbd   :  { %241 = vsyncpa [#allocation5], 1 }

</bundles_post_ra>
